<compile_context>
chip_gen: v6e
topology: v6e:2x2x1
jax: 0.10.0
libtpu: 0.0.40
codegen_flags: <defaults>
</compile_context>

<pallas_src>
import math
import functools

import jax
import jax.numpy as jnp
from jax.experimental import pallas as pl
from jax.experimental.pallas import tpu as pltpu


def _round_up(x: int, m: int) -> int:
    return ((x + m - 1) // m) * m


def _maybe_pad2d(a, rows_to, cols_to):
    r, c = a.shape
    if r == rows_to and c == cols_to:
        return a
    return jnp.pad(a, ((0, rows_to - r), (0, cols_to - c)))


def _classifier_avh_kernel(x_ref, wt_ref, y_ref, r_ref, b_ref, o_ref):
    """x:(tm,tk)  wt:(tk,tn)  y:(tm,tn)  r:(tm,1)  b:(1,tn)  o:(tm,tn) f32.

    Output block is k-invariant -> it stays resident in VMEM across the whole
    reduction axis and doubles as the accumulator (no scratch needed).
    """
    k = pl.program_id(2)

    @pl.when(k == 0)
    def _init():
        o_ref[...] = jnp.zeros_like(o_ref)

    # MXU contraction, f32 accumulation directly into the resident output tile.
    o_ref[...] += jnp.dot(x_ref[...], wt_ref[...],
                          preferred_element_type=jnp.float32)

    @pl.when(k == pl.num_programs(2) - 1)
    def _epilogue():
        logits = o_ref[...] * r_ref[...]                    # (tm,tn) * (tm,1)
        ry = jnp.float32(0.001) * y_ref[...]
        # Exact reciprocal keeps us well within the 1e-5 tolerance; the divide
        # becomes an EUP reciprocal + VPU multiply, once per output tile.
        inv = pl.reciprocal(ry + jnp.float32(1.0), approx=False)
        o_ref[...] = (logits + ry) * inv + b_ref[...]       # + (1,tn) bias


@functools.partial(jax.jit,
                   static_argnames=("tm", "tn", "tk", "compute_dtype"))
def classifier_layer_avh(x, weight, Y, r_st, bias, *,
                         tm=512, tn=512, tk=1024,
                         compute_dtype=jnp.float32):
    """Forward pass of ClassifierLayerAVH.

    x:(N,D), weight:(C,D), Y:(N,C), r_st:(N,1), bias:(C,) or None.
    Returns (N,C) f32 pre-softmax logits.

    compute_dtype=jnp.bfloat16 halves x/W DMA bytes and uses the MXU-native
    dtype (f32 accumulation retained), but may exceed a 1e-5 tolerance; the
    default keeps full f32 inputs.

    For repeated calls with fixed parameters, jit over the surrounding step so
    XLA hoists the (constant) weight transpose/pad out of the per-call path.
    """
    N, D = x.shape
    C = weight.shape[0]
    if bias is None:
        bias = jnp.zeros((C,), jnp.float32)

    # Tile sizes: sublane-aligned tm, lane-aligned tn/tk, clamped to the
    # (padded) problem size so tiny problems don't over-allocate.
    tm = min(tm, _round_up(N, 8))
    tn = min(tn, _round_up(C, 128))
    tk = min(tk, _round_up(D, 128))
    N_p = _round_up(N, tm)
    C_p = _round_up(C, tn)
    D_p = _round_up(D, tk)

    # Conditional padding (and one-time W transpose). Padded D contributes 0
    # to the contraction; padded classes stay 0 and are sliced off below.
    x_p = _maybe_pad2d(x.astype(compute_dtype), N_p, D_p)
    wt_p = _maybe_pad2d(weight.astype(compute_dtype).T, D_p, C_p)
    y_p = _maybe_pad2d(Y.astype(jnp.float32), N_p, C_p)
    r_p = _maybe_pad2d(r_st.astype(jnp.float32), N_p, 1)
    b_p = _maybe_pad2d(bias.astype(jnp.float32).reshape(1, C), 1, C_p)

    grid = (N_p // tm, C_p // tn, D_p // tk)

    # Advisory cost estimate including grid re-read factors:
    #   x is streamed once per class-tile (C_p/tn), W.T once per batch-tile
    #   (N_p/tm); Y read once, output written once.
    in_itemsize = jnp.dtype(compute_dtype).itemsize
    flops = 2 * N_p * C_p * D_p
    bytes_accessed = (
        in_itemsize * N_p * D_p * (C_p // tn)       # x re-reads
        + in_itemsize * D_p * C_p * (N_p // tm)     # W.T re-reads
        + 4 * N_p * C_p                             # Y read
        + 4 * N_p * C_p                             # output write
        + 4 * (N_p + C_p)                           # r_st + bias
    )

    out_p = pl.pallas_call(
        _classifier_avh_kernel,
        out_shape=jax.ShapeDtypeStruct((N_p, C_p), jnp.float32),
        grid_spec=pltpu.PrefetchScalarGridSpec(
            num_scalar_prefetch=0,
            grid=grid,
            in_specs=[
                pl.BlockSpec((tm, tk), lambda i, j, k: (i, k)),   # x
                pl.BlockSpec((tk, tn), lambda i, j, k: (k, j)),   # W.T
                pl.BlockSpec((tm, tn), lambda i, j, k: (i, j)),   # Y
                pl.BlockSpec((tm, 1), lambda i, j, k: (i, 0)),    # r_st
                pl.BlockSpec((1, tn), lambda i, j, k: (0, j)),    # bias
            ],
            out_specs=pl.BlockSpec((tm, tn), lambda i, j, k: (i, j)),
        ),
        compiler_params=pltpu.CompilerParams(
            dimension_semantics=("parallel", "parallel", "arbitrary"),
            # ~12-14 MiB double-buffered footprint at 512/512/1024 f32 tiles;
            # 40 MiB leaves headroom yet stays inside v7x's 64 MiB physical
            # VMEM (and overrides v5e's 16 MiB scoped default).
            vmem_limit_bytes=40 * 1024 * 1024,
        ),
        cost_estimate=pl.CostEstimate(
            flops=flops, transcendentals=0, bytes_accessed=bytes_accessed),
    )(x_p, wt_p, y_p, r_p, b_p)

    if N_p == N and C_p == C:
        return out_p
    return out_p[:N, :C]


def reference_forward(x, weight, Y, r_st, bias):
    logits = (x @ weight.T) * r_st
    ry = 0.001 * Y
    out = (logits + ry) / (ry + 1.0)
    return out + bias[None, :]


if __name__ == "__main__":
    key = jax.random.PRNGKey(0)
    k_x, k_w, k_y, k_r, k_b = jax.random.split(key, 5)

    N = 8    # batch
    D = 32   # input_features
    C = 4    # output_features (num classes)

    # Module parameters (uniform(-1/sqrt(D), 1/sqrt(D)) init, as in the module)
    bound = 1.0 / math.sqrt(D)
    weight = jax.random.uniform(k_w, (C, D), jnp.float32, -bound, bound)
    bias = jax.random.uniform(k_b, (C,), jnp.float32, -bound, bound)

    # Forward inputs
    x = jax.random.normal(k_x, (N, D), jnp.float32)
    Y = jax.nn.one_hot(jax.random.randint(k_y, (N,), 0, C), C, dtype=jnp.float32)
    r_st = jax.random.uniform(k_r, (N, 1), jnp.float32, 0.5, 1.5)

    out = classifier_layer_avh(x, weight, Y, r_st, bias)
    out = jax.block_until_ready(out)

    ref = reference_forward(x, weight, Y, r_st, bias)
    assert out.shape == (N, C)
    assert jnp.allclose(out, ref, atol=1e-5, rtol=1e-5), "mismatch vs reference"

    print("KERNEL_OK")
</pallas_src>

<mosaic_0001>
module attributes {stable_mosaic.version = 11 : i64} {
  func.func @_classifier_avh_kernel(%arg0: i32, %arg1: i32, %arg2: i32, %arg3: memref<8x128xf32, #tpu.memory_space<vmem>>, %arg4: memref<128x128xf32, #tpu.memory_space<vmem>>, %arg5: memref<8x128xf32, #tpu.memory_space<vmem>>, %arg6: memref<8x1xf32, #tpu.memory_space<vmem>>, %arg7: memref<1x128xf32, #tpu.memory_space<vmem>>, %arg8: memref<8x128xf32, #tpu.memory_space<vmem>>) attributes {dimension_semantics = [#tpu.dimension_semantics<parallel>, #tpu.dimension_semantics<parallel>, #tpu.dimension_semantics<arbitrary>], iteration_bounds = array<i64: 1, 1, 1>, scalar_prefetch = 0 : i64, scratch_operands = 0 : i64, tpu.core_type = #tpu.core_type<tc>, window_params = [{transform_indices = @transform_0, window_bounds = array<i64: 8, 128>}, {transform_indices = @transform_1, window_bounds = array<i64: 128, 128>}, {transform_indices = @transform_2, window_bounds = array<i64: 8, 128>}, {transform_indices = @transform_3, window_bounds = array<i64: 8, 1>}, {transform_indices = @transform_4, window_bounds = array<i64: 1, 128>}, {transform_indices = @transform_5, window_bounds = array<i64: 8, 128>}]} {
    %c0_i32 = arith.constant 0 : i32
    %0 = arith.cmpi eq, %arg2, %c0_i32 : i32
    %1 = arith.extui %0 : i1 to i32
    %c0_i32_0 = arith.constant 0 : i32
    %2 = arith.cmpi ne, %1, %c0_i32_0 : i32
    scf.if %2 {
      %cst_10 = arith.constant 0.000000e+00 : f32
      %12 = vector.broadcast %cst_10 : f32 to vector<8x128xf32>
      %c0_11 = arith.constant 0 : index
      %c0_12 = arith.constant 0 : index
      %13 = vector.load %arg8[%c0_11, %c0_12] : memref<8x128xf32, #tpu.memory_space<vmem>>, vector<8x128xf32>
      tpu.vector_store %arg8[%c0_11, %c0_12], %12 {strides = array<i32>} : memref<8x128xf32, #tpu.memory_space<vmem>>, vector<8x128xf32>,
    } else {
    }
    %c0 = arith.constant 0 : index
    %c0_1 = arith.constant 0 : index
    %3 = vector.load %arg8[%c0, %c0_1] : memref<8x128xf32, #tpu.memory_space<vmem>>, vector<8x128xf32>
    %c0_2 = arith.constant 0 : index
    %c0_3 = arith.constant 0 : index
    %4 = vector.load %arg3[%c0_2, %c0_3] : memref<8x128xf32, #tpu.memory_space<vmem>>, vector<8x128xf32>
    %c0_4 = arith.constant 0 : index
    %c0_5 = arith.constant 0 : index
    %5 = vector.load %arg4[%c0_4, %c0_5] : memref<128x128xf32, #tpu.memory_space<vmem>>, vector<128x128xf32>
    %cst = arith.constant dense<0.000000e+00> : vector<8x128xf32>
    %6 = tpu.matmul %4, %5, %cst {dimension_numbers = #tpu.dot_dimension_numbers<[1], [0], [0], [1], [0, 0, 1, 1], [], []>} : vector<8x128xf32>, vector<128x128xf32>, vector<8x128xf32> -> vector<8x128xf32>
    %7 = arith.addf %3, %6 : vector<8x128xf32>
    %c0_6 = arith.constant 0 : index
    %c0_7 = arith.constant 0 : index
    %8 = vector.load %arg8[%c0_6, %c0_7] : memref<8x128xf32, #tpu.memory_space<vmem>>, vector<8x128xf32>
    tpu.vector_store %arg8[%c0_6, %c0_7], %7 {strides = array<i32>} : memref<8x128xf32, #tpu.memory_space<vmem>>, vector<8x128xf32>,
    %c0_i32_8 = arith.constant 0 : i32
    %9 = arith.cmpi eq, %arg2, %c0_i32_8 : i32
    %10 = arith.extui %9 : i1 to i32
    %c0_i32_9 = arith.constant 0 : i32
    %11 = arith.cmpi ne, %10, %c0_i32_9 : i32
    scf.if %11 {
      %c0_10 = arith.constant 0 : index
      %c0_11 = arith.constant 0 : index
      %12 = vector.load %arg8[%c0_10, %c0_11] : memref<8x128xf32, #tpu.memory_space<vmem>>, vector<8x128xf32>
      %c0_12 = arith.constant 0 : index
      %c0_13 = arith.constant 0 : index
      %13 = vector.load %arg6[%c0_12, %c0_13] : memref<8x1xf32, #tpu.memory_space<vmem>>, vector<8x1xf32>
      %14 = vector.broadcast %13 : vector<8x1xf32> to vector<8x128xf32>
      %15 = arith.mulf %12, %14 : vector<8x128xf32>
      %c0_14 = arith.constant 0 : index
      %c0_15 = arith.constant 0 : index
      %16 = vector.load %arg5[%c0_14, %c0_15] : memref<8x128xf32, #tpu.memory_space<vmem>>, vector<8x128xf32>
      %cst_16 = arith.constant 1.000000e-03 : f32
      %17 = vector.broadcast %cst_16 : f32 to vector<8x128xf32>
      %18 = arith.mulf %17, %16 : vector<8x128xf32>
      %cst_17 = arith.constant 1.000000e+00 : f32
      %19 = vector.broadcast %cst_17 : f32 to vector<8x128xf32>
      %20 = arith.addf %18, %19 : vector<8x128xf32>
      %21 = tpu.reciprocal %20 : vector<8x128xf32> -> vector<8x128xf32>
      %22 = arith.addf %15, %18 : vector<8x128xf32>
      %23 = arith.mulf %22, %21 : vector<8x128xf32>
      %c0_18 = arith.constant 0 : index
      %c0_19 = arith.constant 0 : index
      %24 = vector.load %arg7[%c0_18, %c0_19] : memref<1x128xf32, #tpu.memory_space<vmem>>, vector<1x128xf32>
      %25 = vector.broadcast %24 : vector<1x128xf32> to vector<8x128xf32>
      %26 = arith.addf %23, %25 : vector<8x128xf32>
      %c0_20 = arith.constant 0 : index
      %c0_21 = arith.constant 0 : index
      %27 = vector.load %arg8[%c0_20, %c0_21] : memref<8x128xf32, #tpu.memory_space<vmem>>, vector<8x128xf32>
      tpu.vector_store %arg8[%c0_20, %c0_21], %26 {strides = array<i32>} : memref<8x128xf32, #tpu.memory_space<vmem>>, vector<8x128xf32>,
    } else {
    }
    return
  }
  func.func @transform_0(%arg0: i32, %arg1: i32, %arg2: i32) -> (i32, i32) {
    %c0_i32 = arith.constant 0 : i32
    return %arg0, %arg2 : i32, i32
  }
  func.func @transform_1(%arg0: i32, %arg1: i32, %arg2: i32) -> (i32, i32) {
    %c0_i32 = arith.constant 0 : i32
    return %arg2, %arg1 : i32, i32
  }
  func.func @transform_2(%arg0: i32, %arg1: i32, %arg2: i32) -> (i32, i32) {
    %c0_i32 = arith.constant 0 : i32
    return %arg0, %arg1 : i32, i32
  }
  func.func @transform_3(%arg0: i32, %arg1: i32, %arg2: i32) -> (i32, i32) {
    %c0_i32 = arith.constant 0 : i32
    %c0_i32_0 = arith.constant 0 : i32
    return %arg0, %c0_i32 : i32, i32
  }
  func.func @transform_4(%arg0: i32, %arg1: i32, %arg2: i32) -> (i32, i32) {
    %c0_i32 = arith.constant 0 : i32
    %c0_i32_0 = arith.constant 0 : i32
    return %c0_i32, %arg1 : i32, i32
  }
  func.func @transform_5(%arg0: i32, %arg1: i32, %arg2: i32) -> (i32, i32) {
    %c0_i32 = arith.constant 0 : i32
    return %arg0, %arg1 : i32, i32
  }
}

</mosaic_0001>

<bundles_post_ra>
// kernel: classifier_layer_avh.1
= control target key start
LH: loop header
LB: loop body
LE: loop exit
PB: predicated region body
PF: predicated region fallthrough
CT: control target
= control target key end

     0   :  { %v204_v0 = vmov 0.0   ;;  %vm205_vm0 = vmmov 0   ;;  %v206_v3 = vmov 0   ;;  %s300_s1 = inlined_call_operand.vmem [shape: f32[128,128], index: 1, kind: input, shape index: {}]   ;;  %s301_s3 = inlined_call_operand.vmem [shape: f32[8,1], index: 3, kind: input, shape index: {}]   ;;  %s302_s0 = inlined_call_operand.vmem [shape: f32[8,128], index: 0, kind: input, shape index: {}]   ;;  %s303_s2 = inlined_call_operand.vmem [shape: f32[8,128], index: 2, kind: input, shape index: {}]   ;;  %s304_s4 = inlined_call_operand.vmem [shape: f32[1,128], index: 4, kind: input, shape index: {}]   ;;  %s305_s5 = inlined_call_operand.vmem [shape: f32[8,128], index: 5, kind: output, shape index: {}]  }
   0x1   :  { %163 = vmatprep.subr.mxu0 %v204_v0  ;;  %v42_v1 = vld [vmem:[%s300_s1 + $0x78] sm:$0xff]  ;;  %v41_v2 = vld [vmem:[%s300_s1 + $0x70] sm:$0xff]  ;;  %195 = vmatprep.mubr.msk.f32.mxu0 %vm205_vm0, %v204_v0  ;;  %v40_v4 = vld [vmem:[%s300_s1 + $0x68] sm:$0xff] }
   0x2   :  { %164 = vmatpush3.msra.mxu0 %v42_v1  ;;  %201 = vset.pattern.permute.xlu0 %v206_v3  ;;  %v39_v5 = vld [vmem:[%s300_s1 + $0x60] sm:$0xff]  ;;  %v38_v7 = vld [vmem:[%s300_s1 + $0x58] sm:$0xff]  ;;  %v37_v8 = vld [vmem:[%s300_s1 + $0x50] sm:$0xff] }
   0x3   :  { %165 = vmatprep.subr.mxu0 %v204_v0  ;;  %v119_v6 = vld [vmem:[%s301_s3] sm:$0xff]  ;;  %v36_v9 = vld [vmem:[%s300_s1 + $0x48] sm:$0xff]  ;;  %v34_v11 = vld [vmem:[%s300_s1 + $0x38] sm:$0xff] }
   0x4   :  { %166 = vmatpush3.msra.mxu0 %v41_v2  ;;  %122 = vperm.xlu0 %201, %v119_v6   ;;  %v35_v10 = vld [vmem:[%s300_s1 + $0x40] sm:$0xff]  ;;  %v33_v12 = vld [vmem:[%s300_s1 + $0x30] sm:$0xff]  ;;  %v32_v13 = vld [vmem:[%s300_s1 + $0x28] sm:$0xff] }
   0x5   :  { %167 = vmatprep.subr.mxu0 %v204_v0  ;;  %v31_v14 = vld [vmem:[%s300_s1 + $0x20] sm:$0xff]  ;;  %v30_v15 = vld [vmem:[%s300_s1 + $0x18] sm:$0xff]  ;;  %v29_v16 = vld [vmem:[%s300_s1 + $0x10] sm:$0xff] }
   0x6   :  { %168 = vmatpush3.msra.mxu0 %v40_v4  ;;  %v28_v17 = vld [vmem:[%s300_s1 + $0x8] sm:$0xff]  ;;  %v27_v18 = vld [vmem:[%s300_s1] sm:$0xff] }
   0x7   :  { %169 = vmatprep.subr.mxu0 %v204_v0  ;;  %v26_v19 = vld [vmem:[%s302_s0] sm:$0xff] }
   0x8   :  { %170 = vmatpush3.msra.mxu0 %v39_v5  ;;  %v126_v20 = vld [vmem:[%s303_s2] sm:$0xff] }
   0x9   :  { %171 = vmatprep.subr.mxu0 %v204_v0  ;;  %v127_v21 = vmul.f32 0.001, %v126_v20  ;;  %v145_v29 = vld [vmem:[%s304_s4] ss:$0 sm:$0xff] }
   0xa   :  { %172 = vmatpush3.msra.mxu0 %v38_v7 }
   0xb   :  { %173 = vmatprep.subr.mxu0 %v204_v0  ;;  %v128_v22 = vadd.f32 1.0, %v127_v21 }
   0xc   :  { %174 = vmatpush3.msra.mxu0 %v37_v8 }
   0xd   :  { %175 = vmatprep.subr.mxu0 %v204_v0  ;;  %202 = vrcp.f32 %v128_v22 }
   0xe   :  { %176 = vmatpush3.msra.mxu0 %v36_v9 }
   0xf   :  { %177 = vmatprep.subr.mxu0 %v204_v0 }
  0x10   :  { %178 = vmatpush3.msra.mxu0 %v35_v10 }
  0x11   :  { %179 = vmatprep.subr.mxu0 %v204_v0 }
  0x12   :  { %180 = vmatpush3.msra.mxu0 %v34_v11 }
  0x13   :  { %181 = vmatprep.subr.mxu0 %v204_v0 }
  0x14   :  { %182 = vmatpush3.msra.mxu0 %v33_v12 }
  0x15   :  { %183 = vmatprep.subr.mxu0 %v204_v0 }
  0x16   :  { %184 = vmatpush3.msra.mxu0 %v32_v13 }
  0x17   :  { %185 = vmatprep.subr.mxu0 %v204_v0 }
  0x18   :  { %186 = vmatpush3.msra.mxu0 %v31_v14 }
  0x19   :  { %187 = vmatprep.subr.mxu0 %v204_v0 }
  0x1a   :  { %188 = vmatpush3.msra.mxu0 %v30_v15  ;;  %v203_v27 = vpop.eup %202 }
  0x1b   :  { %189 = vmatprep.subr.mxu0 %v204_v0 }
  0x1c   :  { %190 = vmatpush3.msra.mxu0 %v29_v16 }
  0x1d   :  { %191 = vmatprep.subr.mxu0 %v204_v0 }
  0x1e   :  { %192 = vmatpush3.msra.mxu0 %v28_v17 }
  0x1f   :  { %193 = vmatprep.subr.mxu0 %v204_v0 }
  0x20   :  { %194 = vmatpush3.msra.mxu0 %v27_v18 }
  0x21   :  { %196 = vmatmul.mubr.f32.vlgmr.msra.gmra.mxu0 %v26_v19 }
  0x7f   :  { %v123_v24 = vpop.permute.xlu0 %122 }
  0xe1   :  { %v109_v23 = vpop.f32.mrf.mxu0 }
  0xe2   :  { %v125_v26 = vmul.f32 %v123_v24, %v109_v23 }
  0xe3   :  { %v197_v25 = vpop.f32.mrf.mxu0 }
  0xe4   :  { %v130_v28 = vadd.f32 %v127_v21, %v125_v26 }
  0xe6   :  { %v131_v30 = vmul.f32 %v203_v27, %v130_v28 }
  0xe8   :  { %v139_v31 = vadd.f32 %v145_v29, %v131_v30 }
  0xea   :  { %140 = vst [vmem:[%s305_s5] sm:$0xff] %v139_v31 }

</bundles_post_ra>
